<compile_context>
chip_gen: v7x
topology: tpu7x:2x2x1
jax: 0.10.0
libtpu: 0.0.40
codegen_flags: <defaults>
</compile_context>

<pallas_src>
import math
import functools

import jax
import jax.numpy as jnp
from jax.experimental import pallas as pl
from jax.experimental.pallas import tpu as pltpu


def _attn_layer_kernel(inner_ref, wqkv_ref, bqkv_ref, woah_ref, wlx_ref,
                       bcomb_ref, out_ref, *, num_heads: int,
                       use_bf16_matmul: bool):
    """One grid step = Bt batch elements.

    inner_ref : (Bt, S, D)
    wqkv_ref  : (D, 3D)      fused q|k|v along N; Q columns pre-scaled by 1/sqrt(hd)
    bqkv_ref  : (1, 3D)
    woah_ref  : (H, hd, D)   (wo @ wl_a) reshaped per head
    wlx_ref   : (D, D)       lin weight for the `x` half of cat([attn, x])
    bcomb_ref : (1, D)       bo @ wl_a + bl
    out_ref   : (Bt, S, D)
    """
    Bt, S, D = inner_ref.shape
    H = num_heads
    hd = D // H
    mm = jnp.bfloat16 if use_bf16_matmul else jnp.float32

    x = inner_ref[...].reshape(Bt * S, D)            # fold batch into M (free)

    # ---- fused QKV projection: one MXU push with N = 3D ----
    qkv = jnp.dot(x.astype(mm), wqkv_ref[...].astype(mm),
                  preferred_element_type=jnp.float32) + bqkv_ref[...]
    qkv3 = qkv.reshape(Bt, S, 3 * D)                 # leading-dim split (free)

    def split_heads(base):
        # Value-level lane slices stacked along a leading axis -> (Bt*H, S, hd).
        # (No ref stores / masked vst; see TODO at top re: single-relayout split.)
        hs = [qkv3[:, :, base + h * hd: base + (h + 1) * hd] for h in range(H)]
        return jnp.stack(hs, axis=1).reshape(Bt * H, S, hd)

    qh = split_heads(0)
    kh = split_heads(D)
    vh = split_heads(2 * D)

    # ---- batched scaled-dot-product attention over (Bt*H) head-batches ----
    # (scale already folded into w_qkv's Q columns)
    s = jnp.einsum('bqd,bkd->bqk', qh.astype(mm), kh.astype(mm),
                   preferred_element_type=jnp.float32)
    s = s - jnp.max(s, axis=-1, keepdims=True)
    p = jnp.exp(s)
    p = p / jnp.sum(p, axis=-1, keepdims=True)       # exact softmax (f32)
    # TODO(synk): dropout(p=0.25) on attention weights omitted (eval mode).
    o = jnp.einsum('bqk,bkd->bqd', p.astype(mm), vh.astype(mm),
                   preferred_element_type=jnp.float32)        # (Bt*H, S, hd)

    # ---- head merge fused into the folded output->lin projection ----
    #   o_merged @ (wo @ wl_a) == sum_h o_h @ W_oa[h*hd:(h+1)*hd, :]
    # so no lane-concat, scratch buffer, or masked stores are needed.
    woa_v = woah_ref[...].astype(mm)                               # (H, hd, D)
    woa = jnp.broadcast_to(woa_v[None], (Bt, H, hd, D)).reshape(Bt * H, hd, D)
    proj = jnp.einsum('bsd,bde->bse', o.astype(mm), woa,
                      preferred_element_type=jnp.float32)          # (Bt*H, S, D)
    proj4 = proj.reshape(Bt, H, S, D)
    lin_a = proj4[:, 0]
    for h in range(1, H):                                          # value adds only
        lin_a = lin_a + proj4[:, h]
    lin_a = lin_a.reshape(Bt * S, D)

    # ---- lin(cat([attn, x], -1)) with folded weights, then ReLU ----
    lin = (lin_a
           + jnp.dot(x.astype(mm), wlx_ref[...].astype(mm),
                     preferred_element_type=jnp.float32)
           + bcomb_ref[...])
    y = jnp.maximum(lin, 0.0)                                      # (Bt*S, D)

    # ---- single full-block store (no per-row store loop) ----
    out_ref[...] = y.reshape(Bt, S, D).astype(out_ref.dtype)


def attn_block_forward(x_c, params, num_heads, *, num_parallel_blocks=1,
                       use_bf16_matmul=False):
    """Pallas implementation of AttnBlock.forward(x_c) (single AttnLayer)."""
    leaf, inner, _root_unused = x_c
    B, S, D = inner.shape
    assert D % num_heads == 0, "dim must be divisible by num_heads"
    H = num_heads
    hd = D // H

    # nb > 1 only pays on dual-TC chips (v7x) and only once Bt >= 8; default 1.
    nb = num_parallel_blocks
    if nb < 1 or B % nb != 0:
        nb = 1
    Bt = B // nb

    f32 = jnp.float32
    hi = jax.lax.Precision.HIGHEST

    # --- glue: PyTorch-convention weights -> x @ w layout, QKV fused ---
    in_w = params["in_proj_weight"].astype(f32)        # (3D, D)
    in_b = params["in_proj_bias"].astype(f32)          # (3D,)
    w_qkv = in_w.T                                     # (D, 3D)
    b_qkv = in_b.reshape(1, 3 * D)
    # Fold 1/sqrt(hd) into the Q columns (exact).
    scale = 1.0 / math.sqrt(hd)
    col_scale = jnp.concatenate([jnp.full((D,), scale, f32),
                                 jnp.ones((2 * D,), f32)]).reshape(1, 3 * D)
    w_qkv = w_qkv * col_scale
    b_qkv = b_qkv * col_scale

    wo = params["out_proj_weight"].astype(f32).T       # (D, D)
    bo = params["out_proj_bias"].astype(f32).reshape(1, D)
    wl = params["lin_weight"].astype(f32).T            # (2D, D)
    wl_a, wl_x = wl[:D], wl[D:]
    bl = params["lin_bias"].astype(f32).reshape(1, D)

    # Fold the attention output projection into lin (algebraically exact).
    w_oa = jnp.dot(wo, wl_a, precision=hi)             # (D, D)
    b_comb = jnp.dot(bo, wl_a, precision=hi) + bl      # (1, D)
    w_oa_h = w_oa.reshape(H, hd, D)                    # per-head K slices

    kernel = functools.partial(_attn_layer_kernel, num_heads=H,
                               use_bf16_matmul=use_bf16_matmul)
    # Weight/bias specs use a constant index map -> same block across the grid.
    full = lambda shape: pl.BlockSpec(shape, lambda b: (0,) * len(shape))

    flops = B * (2 * S * D * 3 * D                     # fused QKV
                 + 2 * H * S * S * hd * 2              # scores + PV
                 + 2 * S * D * D                       # folded output->lin proj
                 + 2 * S * D * D)                      # x @ wl_x
    cost = pl.CostEstimate(
        flops=flops,
        transcendentals=B * H * S * S,
        bytes_accessed=4 * (2 * B * S * D + 3 * D * D + 3 * D
                            + D * D + D * D + 2 * D))

    inner_new = pl.pallas_call(
        kernel,
        out_shape=jax.ShapeDtypeStruct((B, S, D), inner.dtype),
        grid_spec=pltpu.PrefetchScalarGridSpec(
            num_scalar_prefetch=0,
            grid=(nb,),
            in_specs=[
                pl.BlockSpec((Bt, S, D), lambda b: (b, 0, 0)),   # inner
                full((D, 3 * D)), full((1, 3 * D)),              # w_qkv, b_qkv
                full((H, hd, D)),                                # wo@wl_a per head
                full((D, D)), full((1, D)),                      # wl_x, b_comb
            ],
            out_specs=pl.BlockSpec((Bt, S, D), lambda b: (b, 0, 0)),
        ),
        compiler_params=pltpu.CompilerParams(
            dimension_semantics=("parallel",)),
        cost_estimate=cost,
    )(inner, w_qkv, b_qkv, w_oa_h, wl_x, b_comb)

    # root = inner.sum(dim=1): trivially cheap in XLA; keeping it out of the
    # kernel avoids a lane-sparse (1, D) output pipeline.
    root_new = inner_new.sum(axis=1)
    return [leaf, inner_new, root_new]


def _reference_forward(x_c, params, num_heads):
    """Pure-JAX reference mirroring torch.nn.MultiheadAttention (eval mode)."""
    leaf, inner, _ = x_c
    B, S, D = inner.shape
    hd = D // num_heads
    hi = jax.lax.Precision.HIGHEST
    in_w, in_b = params["in_proj_weight"], params["in_proj_bias"]
    q = jnp.einsum('bsd,de->bse', inner, in_w[:D].T, precision=hi) + in_b[:D]
    k = jnp.einsum('bsd,de->bse', inner, in_w[D:2 * D].T, precision=hi) + in_b[D:2 * D]
    v = jnp.einsum('bsd,de->bse', inner, in_w[2 * D:].T, precision=hi) + in_b[2 * D:]
    reshape = lambda t: t.reshape(B, S, num_heads, hd).transpose(0, 2, 1, 3)
    q, k, v = reshape(q), reshape(k), reshape(v)
    s = jnp.einsum("bhqd,bhkd->bhqk", q, k, precision=hi) / math.sqrt(hd)
    p = jax.nn.softmax(s, axis=-1)
    o = jnp.einsum("bhqk,bhkd->bhqd", p, v,
                   precision=hi).transpose(0, 2, 1, 3).reshape(B, S, D)
    attn = jnp.einsum('bsd,de->bse', o, params["out_proj_weight"].T,
                      precision=hi) + params["out_proj_bias"]
    cat = jnp.concatenate([attn, inner], axis=-1)
    new_inner = jax.nn.relu(
        jnp.einsum('bsf,fe->bse', cat, params["lin_weight"].T, precision=hi)
        + params["lin_bias"])
    return [leaf, new_inner, new_inner.sum(axis=1)]


if __name__ == "__main__":
    # Small shapes: batch=2, seq=8, dim=32, heads=4.
    B, S, D, H = 2, 8, 32, 4

    key = jax.random.PRNGKey(0)
    keys = jax.random.split(key, 10)

    leaf = jax.random.normal(keys[0], (B, S, D), jnp.float32)
    inner = jax.random.normal(keys[1], (B, S, D), jnp.float32)
    root = jax.random.normal(keys[2], (B, D), jnp.float32)
    x_c = [leaf, inner, root]

    # Deterministic synthetic parameters (PyTorch shape conventions).
    params = {
        "in_proj_weight": jax.random.normal(keys[3], (3 * D, D), jnp.float32) * 0.1,
        "in_proj_bias":   jax.random.normal(keys[4], (3 * D,), jnp.float32) * 0.1,
        "out_proj_weight": jax.random.normal(keys[5], (D, D), jnp.float32) * 0.1,
        "out_proj_bias":   jax.random.normal(keys[6], (D,), jnp.float32) * 0.1,
        "lin_weight":      jax.random.normal(keys[7], (D, 2 * D), jnp.float32) * 0.1,
        "lin_bias":        jax.random.normal(keys[8], (D,), jnp.float32) * 0.1,
    }

    out = attn_block_forward(x_c, params, num_heads=H)
    out = [jax.block_until_ready(o) for o in out]

    # Sanity check against a pure-JAX (HIGHEST-precision) reference.  Exact
    # softmax now -> tolerance tightened from the previous 5e-3; the small
    # residual comes from the wo@wl_a folding and MXU accumulation order.
    ref = _reference_forward(x_c, params, num_heads=H)
    assert out[0].shape == (B, S, D)
    assert out[1].shape == (B, S, D)
    assert out[2].shape == (B, D)
    for o, r in zip(out, ref):
        assert jnp.allclose(o, r, atol=2e-3, rtol=2e-3), "mismatch vs reference"

    print("KERNEL_OK")
</pallas_src>

<mosaic_0001>
module attributes {stable_mosaic.version = 11 : i64} {
  func.func @_attn_layer_kernel(%arg0: i32, %arg1: memref<2x8x32xf32, #tpu.memory_space<vmem>>, %arg2: memref<32x96xf32, #tpu.memory_space<vmem>>, %arg3: memref<1x96xf32, #tpu.memory_space<vmem>>, %arg4: memref<4x8x32xf32, #tpu.memory_space<vmem>>, %arg5: memref<32x32xf32, #tpu.memory_space<vmem>>, %arg6: memref<1x32xf32, #tpu.memory_space<vmem>>, %arg7: memref<2x8x32xf32, #tpu.memory_space<vmem>>) attributes {dimension_semantics = [#tpu.dimension_semantics<parallel>], iteration_bounds = array<i64: 1>, scalar_prefetch = 0 : i64, scratch_operands = 0 : i64, tpu.core_type = #tpu.core_type<tc>, window_params = [{transform_indices = @transform_0, window_bounds = array<i64: 2, 8, 32>}, {pipeline_mode = #tpu.pipeline_mode<synchronous>, transform_indices = @transform_1, window_bounds = array<i64: 32, 96>}, {pipeline_mode = #tpu.pipeline_mode<synchronous>, transform_indices = @transform_2, window_bounds = array<i64: 1, 96>}, {pipeline_mode = #tpu.pipeline_mode<synchronous>, transform_indices = @transform_3, window_bounds = array<i64: 4, 8, 32>}, {pipeline_mode = #tpu.pipeline_mode<synchronous>, transform_indices = @transform_4, window_bounds = array<i64: 32, 32>}, {pipeline_mode = #tpu.pipeline_mode<synchronous>, transform_indices = @transform_5, window_bounds = array<i64: 1, 32>}, {transform_indices = @transform_6, window_bounds = array<i64: 2, 8, 32>}]} {
    %c0 = arith.constant 0 : index
    %c0_0 = arith.constant 0 : index
    %c0_1 = arith.constant 0 : index
    %0 = vector.load %arg1[%c0, %c0_0, %c0_1] : memref<2x8x32xf32, #tpu.memory_space<vmem>>, vector<2x8x32xf32>
    %1 = vector.shape_cast %0 : vector<2x8x32xf32> to vector<16x32xf32>
    %c0_2 = arith.constant 0 : index
    %c0_3 = arith.constant 0 : index
    %2 = vector.load %arg2[%c0_2, %c0_3] : memref<32x96xf32, #tpu.memory_space<vmem>>, vector<32x96xf32>
    %cst = arith.constant dense<0.000000e+00> : vector<16x96xf32>
    %3 = tpu.matmul %1, %2, %cst {dimension_numbers = #tpu.dot_dimension_numbers<[1], [0], [0], [1], [0, 0, 1, 1], [], []>} : vector<16x32xf32>, vector<32x96xf32>, vector<16x96xf32> -> vector<16x96xf32>
    %c0_4 = arith.constant 0 : index
    %c0_5 = arith.constant 0 : index
    %4 = vector.load %arg3[%c0_4, %c0_5] : memref<1x96xf32, #tpu.memory_space<vmem>>, vector<1x96xf32>
    %5 = vector.broadcast %4 : vector<1x96xf32> to vector<16x96xf32>
    %6 = arith.addf %3, %5 : vector<16x96xf32>
    %7 = vector.shape_cast %6 : vector<16x96xf32> to vector<2x8x96xf32>
    %8 = vector.extract_strided_slice %7 {offsets = [0, 0, 0], sizes = [2, 8, 8], strides = [1, 1, 1]} : vector<2x8x96xf32> to vector<2x8x8xf32>
    %9 = vector.extract_strided_slice %7 {offsets = [0, 0, 8], sizes = [2, 8, 8], strides = [1, 1, 1]} : vector<2x8x96xf32> to vector<2x8x8xf32>
    %10 = vector.extract_strided_slice %7 {offsets = [0, 0, 16], sizes = [2, 8, 8], strides = [1, 1, 1]} : vector<2x8x96xf32> to vector<2x8x8xf32>
    %11 = vector.extract_strided_slice %7 {offsets = [0, 0, 24], sizes = [2, 8, 8], strides = [1, 1, 1]} : vector<2x8x96xf32> to vector<2x8x8xf32>
    %12 = vector.shape_cast %8 : vector<2x8x8xf32> to vector<2x1x8x8xf32>
    %13 = vector.shape_cast %9 : vector<2x8x8xf32> to vector<2x1x8x8xf32>
    %14 = vector.shape_cast %10 : vector<2x8x8xf32> to vector<2x1x8x8xf32>
    %15 = vector.shape_cast %11 : vector<2x8x8xf32> to vector<2x1x8x8xf32>
    %16 = tpu.concatenate %12, %13, %14, %15 in 1 : vector<2x1x8x8xf32>, vector<2x1x8x8xf32>, vector<2x1x8x8xf32>, vector<2x1x8x8xf32> -> vector<2x4x8x8xf32>
    %17 = vector.shape_cast %16 : vector<2x4x8x8xf32> to vector<8x8x8xf32>
    %18 = vector.extract_strided_slice %7 {offsets = [0, 0, 32], sizes = [2, 8, 8], strides = [1, 1, 1]} : vector<2x8x96xf32> to vector<2x8x8xf32>
    %19 = vector.extract_strided_slice %7 {offsets = [0, 0, 40], sizes = [2, 8, 8], strides = [1, 1, 1]} : vector<2x8x96xf32> to vector<2x8x8xf32>
    %20 = vector.extract_strided_slice %7 {offsets = [0, 0, 48], sizes = [2, 8, 8], strides = [1, 1, 1]} : vector<2x8x96xf32> to vector<2x8x8xf32>
    %21 = vector.extract_strided_slice %7 {offsets = [0, 0, 56], sizes = [2, 8, 8], strides = [1, 1, 1]} : vector<2x8x96xf32> to vector<2x8x8xf32>
    %22 = vector.shape_cast %18 : vector<2x8x8xf32> to vector<2x1x8x8xf32>
    %23 = vector.shape_cast %19 : vector<2x8x8xf32> to vector<2x1x8x8xf32>
    %24 = vector.shape_cast %20 : vector<2x8x8xf32> to vector<2x1x8x8xf32>
    %25 = vector.shape_cast %21 : vector<2x8x8xf32> to vector<2x1x8x8xf32>
    %26 = tpu.concatenate %22, %23, %24, %25 in 1 : vector<2x1x8x8xf32>, vector<2x1x8x8xf32>, vector<2x1x8x8xf32>, vector<2x1x8x8xf32> -> vector<2x4x8x8xf32>
    %27 = vector.shape_cast %26 : vector<2x4x8x8xf32> to vector<8x8x8xf32>
    %28 = vector.extract_strided_slice %7 {offsets = [0, 0, 64], sizes = [2, 8, 8], strides = [1, 1, 1]} : vector<2x8x96xf32> to vector<2x8x8xf32>
    %29 = vector.extract_strided_slice %7 {offsets = [0, 0, 72], sizes = [2, 8, 8], strides = [1, 1, 1]} : vector<2x8x96xf32> to vector<2x8x8xf32>
    %30 = vector.extract_strided_slice %7 {offsets = [0, 0, 80], sizes = [2, 8, 8], strides = [1, 1, 1]} : vector<2x8x96xf32> to vector<2x8x8xf32>
    %31 = vector.extract_strided_slice %7 {offsets = [0, 0, 88], sizes = [2, 8, 8], strides = [1, 1, 1]} : vector<2x8x96xf32> to vector<2x8x8xf32>
    %32 = vector.shape_cast %28 : vector<2x8x8xf32> to vector<2x1x8x8xf32>
    %33 = vector.shape_cast %29 : vector<2x8x8xf32> to vector<2x1x8x8xf32>
    %34 = vector.shape_cast %30 : vector<2x8x8xf32> to vector<2x1x8x8xf32>
    %35 = vector.shape_cast %31 : vector<2x8x8xf32> to vector<2x1x8x8xf32>
    %36 = tpu.concatenate %32, %33, %34, %35 in 1 : vector<2x1x8x8xf32>, vector<2x1x8x8xf32>, vector<2x1x8x8xf32>, vector<2x1x8x8xf32> -> vector<2x4x8x8xf32>
    %37 = vector.shape_cast %36 : vector<2x4x8x8xf32> to vector<8x8x8xf32>
    "tpu.trace_start"() <{level = 10 : i32, message = "bqd,bkd->bqk"}> : () -> ()
    %cst_6 = arith.constant dense<0.000000e+00> : vector<8x8x8xf32>
    %38 = tpu.matmul %17, %27, %cst_6 {dimension_numbers = #tpu.dot_dimension_numbers<[2], [2], [1], [1], [0, 0, 0, 1, 1, 1], [0], [0]>} : vector<8x8x8xf32>, vector<8x8x8xf32>, vector<8x8x8xf32> -> vector<8x8x8xf32>
    "tpu.trace_stop"() : () -> ()
    %cst_7 = arith.constant dense<0xFF800000> : vector<8x8xf32>
    %39 = vector.multi_reduction <maximumf>, %38, %cst_7 [2] : vector<8x8x8xf32> to vector<8x8xf32>
    %40 = vector.shape_cast %39 : vector<8x8xf32> to vector<8x8x1xf32>
    %41 = vector.broadcast %40 : vector<8x8x1xf32> to vector<8x8x8xf32>
    %42 = arith.subf %38, %41 : vector<8x8x8xf32>
    %43 = math.exp %42 : vector<8x8x8xf32>
    %cst_8 = arith.constant dense<0.000000e+00> : vector<8x8xf32>
    %44 = vector.multi_reduction <add>, %43, %cst_8 [2] : vector<8x8x8xf32> to vector<8x8xf32>
    %45 = vector.shape_cast %44 : vector<8x8xf32> to vector<8x8x1xf32>
    %46 = vector.broadcast %45 : vector<8x8x1xf32> to vector<8x8x8xf32>
    %47 = arith.divf %43, %46 : vector<8x8x8xf32>
    "tpu.trace_start"() <{level = 10 : i32, message = "bqk,bkd->bqd"}> : () -> ()
    %cst_9 = arith.constant dense<0.000000e+00> : vector<8x8x8xf32>
    %48 = tpu.matmul %47, %37, %cst_9 {dimension_numbers = #tpu.dot_dimension_numbers<[2], [1], [1], [2], [0, 0, 0, 1, 1, 2], [0], [0]>} : vector<8x8x8xf32>, vector<8x8x8xf32>, vector<8x8x8xf32> -> vector<8x8x8xf32>
    "tpu.trace_stop"() : () -> ()
    %c0_10 = arith.constant 0 : index
    %c0_11 = arith.constant 0 : index
    %c0_12 = arith.constant 0 : index
    %49 = vector.load %arg4[%c0_10, %c0_11, %c0_12] : memref<4x8x32xf32, #tpu.memory_space<vmem>>, vector<4x8x32xf32>
    %50 = vector.shape_cast %49 : vector<4x8x32xf32> to vector<1x4x8x32xf32>
    %51 = vector.shape_cast %50 : vector<1x4x8x32xf32> to vector<1x4x8x32xf32>
    %52 = vector.broadcast %51 : vector<1x4x8x32xf32> to vector<2x4x8x32xf32>
    %53 = vector.shape_cast %52 : vector<2x4x8x32xf32> to vector<8x8x32xf32>
    "tpu.trace_start"() <{level = 10 : i32, message = "bsd,bde->bse"}> : () -> ()
    %cst_13 = arith.constant dense<0.000000e+00> : vector<8x8x32xf32>
    %54 = tpu.matmul %48, %53, %cst_13 {dimension_numbers = #tpu.dot_dimension_numbers<[2], [1], [1], [2], [0, 0, 0, 1, 1, 2], [0], [0]>} : vector<8x8x8xf32>, vector<8x8x32xf32>, vector<8x8x32xf32> -> vector<8x8x32xf32>
    "tpu.trace_stop"() : () -> ()
    %55 = vector.shape_cast %54 : vector<8x8x32xf32> to vector<2x4x8x32xf32>
    %56 = vector.extract_strided_slice %55 {offsets = [0, 0, 0, 0], sizes = [2, 1, 8, 32], strides = [1, 1, 1, 1]} : vector<2x4x8x32xf32> to vector<2x1x8x32xf32>
    %57 = vector.shape_cast %56 : vector<2x1x8x32xf32> to vector<2x8x32xf32>
    %58 = vector.extract_strided_slice %55 {offsets = [0, 1, 0, 0], sizes = [2, 1, 8, 32], strides = [1, 1, 1, 1]} : vector<2x4x8x32xf32> to vector<2x1x8x32xf32>
    %59 = vector.shape_cast %58 : vector<2x1x8x32xf32> to vector<2x8x32xf32>
    %60 = arith.addf %57, %59 : vector<2x8x32xf32>
    %61 = vector.extract_strided_slice %55 {offsets = [0, 2, 0, 0], sizes = [2, 1, 8, 32], strides = [1, 1, 1, 1]} : vector<2x4x8x32xf32> to vector<2x1x8x32xf32>
    %62 = vector.shape_cast %61 : vector<2x1x8x32xf32> to vector<2x8x32xf32>
    %63 = arith.addf %60, %62 : vector<2x8x32xf32>
    %64 = vector.extract_strided_slice %55 {offsets = [0, 3, 0, 0], sizes = [2, 1, 8, 32], strides = [1, 1, 1, 1]} : vector<2x4x8x32xf32> to vector<2x1x8x32xf32>
    %65 = vector.shape_cast %64 : vector<2x1x8x32xf32> to vector<2x8x32xf32>
    %66 = arith.addf %63, %65 : vector<2x8x32xf32>
    %67 = vector.shape_cast %66 : vector<2x8x32xf32> to vector<16x32xf32>
    %c0_14 = arith.constant 0 : index
    %c0_15 = arith.constant 0 : index
    %68 = vector.load %arg5[%c0_14, %c0_15] : memref<32x32xf32, #tpu.memory_space<vmem>>, vector<32x32xf32>
    %cst_16 = arith.constant dense<0.000000e+00> : vector<16x32xf32>
    %69 = tpu.matmul %1, %68, %cst_16 {dimension_numbers = #tpu.dot_dimension_numbers<[1], [0], [0], [1], [0, 0, 1, 1], [], []>} : vector<16x32xf32>, vector<32x32xf32>, vector<16x32xf32> -> vector<16x32xf32>
    %70 = arith.addf %67, %69 : vector<16x32xf32>
    %c0_17 = arith.constant 0 : index
    %c0_18 = arith.constant 0 : index
    %71 = vector.load %arg6[%c0_17, %c0_18] : memref<1x32xf32, #tpu.memory_space<vmem>>, vector<1x32xf32>
    %72 = vector.broadcast %71 : vector<1x32xf32> to vector<16x32xf32>
    %73 = arith.addf %70, %72 : vector<16x32xf32>
    %cst_19 = arith.constant 0.000000e+00 : f32
    %74 = vector.broadcast %cst_19 : f32 to vector<16x32xf32>
    %75 = arith.maximumf %73, %74 : vector<16x32xf32>
    %76 = vector.shape_cast %75 : vector<16x32xf32> to vector<2x8x32xf32>
    %c0_20 = arith.constant 0 : index
    %c0_21 = arith.constant 0 : index
    %c0_22 = arith.constant 0 : index
    %77 = vector.load %arg7[%c0_20, %c0_21, %c0_22] : memref<2x8x32xf32, #tpu.memory_space<vmem>>, vector<2x8x32xf32>
    tpu.vector_store %arg7[%c0_20, %c0_21, %c0_22], %76 {strides = array<i32>} : memref<2x8x32xf32, #tpu.memory_space<vmem>>, vector<2x8x32xf32>,
    return
  }
  func.func @transform_0(%arg0: i32) -> (i32, i32, i32) {
    %c0_i32 = arith.constant 0 : i32
    %c0_i32_0 = arith.constant 0 : i32
    %c0_i32_1 = arith.constant 0 : i32
    return %arg0, %c0_i32, %c0_i32_0 : i32, i32, i32
  }
  func.func @transform_1(%arg0: i32) -> (i32, i32) {
    %c0_i32 = arith.constant 0 : i32
    %c0_i32_0 = arith.constant 0 : i32
    %c0_i32_1 = arith.constant 0 : i32
    return %c0_i32, %c0_i32_0 : i32, i32
  }
  func.func @transform_2(%arg0: i32) -> (i32, i32) {
    %c0_i32 = arith.constant 0 : i32
    %c0_i32_0 = arith.constant 0 : i32
    %c0_i32_1 = arith.constant 0 : i32
    return %c0_i32, %c0_i32_0 : i32, i32
  }
  func.func @transform_3(%arg0: i32) -> (i32, i32, i32) {
    %c0_i32 = arith.constant 0 : i32
    %c0_i32_0 = arith.constant 0 : i32
    %c0_i32_1 = arith.constant 0 : i32
    %c0_i32_2 = arith.constant 0 : i32
    return %c0_i32, %c0_i32_0, %c0_i32_1 : i32, i32, i32
  }
  func.func @transform_4(%arg0: i32) -> (i32, i32) {
    %c0_i32 = arith.constant 0 : i32
    %c0_i32_0 = arith.constant 0 : i32
    %c0_i32_1 = arith.constant 0 : i32
    return %c0_i32, %c0_i32_0 : i32, i32
  }
  func.func @transform_5(%arg0: i32) -> (i32, i32) {
    %c0_i32 = arith.constant 0 : i32
    %c0_i32_0 = arith.constant 0 : i32
    %c0_i32_1 = arith.constant 0 : i32
    return %c0_i32, %c0_i32_0 : i32, i32
  }
  func.func @transform_6(%arg0: i32) -> (i32, i32, i32) {
    %c0_i32 = arith.constant 0 : i32
    %c0_i32_0 = arith.constant 0 : i32
    %c0_i32_1 = arith.constant 0 : i32
    return %arg0, %c0_i32, %c0_i32_0 : i32, i32, i32
  }
}

</mosaic_0001>

<bundles_post_ra>
// kernel: tpu_custom_call.1
= control target key start
LH: loop header
LB: loop body
LE: loop exit
PB: predicated region body
PF: predicated region fallthrough
CT: control target
= control target key end

     0   :  { %11 = vsyncpa [#allocation3], 0  ;;  %s2984_s0 = inlined_call_operand.hbm [shape: f32[2,8,32], index: 0, kind: input, shape index: {}]   ;;  %s2985_s1 = inlined_call_operand.hbm [shape: f32[32,96], index: 1, kind: input, shape index: {}]   ;;  %s2986_s2 = inlined_call_operand.vmem [shape: f32[1,96], index: 2, kind: input, shape index: {}]   ;;  %s2987_s3 = inlined_call_operand.hbm [shape: f32[4,8,32], index: 3, kind: input, shape index: {}]   ;;  %s2988_s4 = inlined_call_operand.hbm [shape: f32[32,32], index: 4, kind: input, shape index: {}]   ;;  %s2989_s5 = inlined_call_operand.vmem [shape: f32[1,32], index: 5, kind: input, shape index: {}]   ;;  %s2990_s6 = inlined_call_operand.hbm [shape: f32[2,8,32], index: 6, kind: output, shape index: {}]  }
   0x1   :  { %12 = vsyncpa [#allocation6], 0 }
   0x2   :  { %13 = vsyncpa [#allocation9], 0 }
   0x3   :  { %14 = vsyncpa [#allocation4], 0  ;;  %s2632_s21 = smov [#allocation5]   ;;  %s2633_s23 = smov [#allocation2]  }
   0x4   :  { %s32_s22 = sshll.u32 %s2632_s21, 4  ;;  %s20_s24 = sshll.u32 %s2633_s23, 4  ;;  %s33_s22 = int_to_ptr.vmem [resolvable:$true] %s32_s22  ;;  %s2681_s24 = int_to_ptr.vmem [resolvable:$true] %s20_s24 }
   0x5   :  { %s2514_s27 = scalar_lea.hbm %s2985_s1, 512 }
   0x6   :  { %p2515_p0 = scmp.ne.s32.totalorder %s2985_s1, %s2514_s27  ;;  %p2518_p1 = scmp.lt.u32.totalorder %s2514_s27, %s2985_s1 }
   0x8   :  { %p2520_p2 = pnand %p2518_p1, %p2515_p0 }
   0xa   :  { %2523 = shalt.err (!%p2520_p2)
}
   0xb   :  { %s2524_s8 = scalar_lea.vmem %s33_s22, 512  ;;  %p2529_p4 = scmp.lt.s32.totalorder %s33_s22, %s33_s22 }
   0xc   :  { %p2525_p3 = scmp.ne.s32.totalorder %s33_s22, %s2524_s8  ;;  %p2530_p5 = scmp.lt.s32.totalorder %s2524_s8, %s2524_s8 }
   0xe   :  { %p2531_p6 = por %p2530_p5, %p2529_p4 }
  0x10   :  { %p2532_p7 = pnand %p2531_p6, %p2525_p3 }
  0x12   :  { %2535 = shalt.err (!%p2532_p7)
}
  0x13   :  { %s2634_s9 = smov 128   ;;  %s2635_s10 = smov 8  }
  0x14   :  { %38 = dma.hbm_to_vmem [thread:$0]  %s2985_s1, 512, %s33_s22, [#allocation6], %s2634_s9, %s2634_s9, %s2635_s10  }
  0x15   :  { %s2536_s15 = scalar_lea.hbm %s2984_s0, 256 }
  0x16   :  { %p2537_p8 = scmp.ne.s32.totalorder %s2984_s0, %s2536_s15  ;;  %p2540_p9 = scmp.lt.u32.totalorder %s2536_s15, %s2984_s0 }
  0x18   :  { %p2542_p10 = pnand %p2540_p9, %p2537_p8 }
  0x1a   :  { %2545 = shalt.err (!%p2542_p10)
}
  0x1b   :  { %s2546_s20 = scalar_lea.vmem %s2681_s24, 256  ;;  %p2551_p12 = scmp.lt.s32.totalorder %s2681_s24, %s2681_s24 }
  0x1c   :  { %p2547_p11 = scmp.ne.s32.totalorder %s2681_s24, %s2546_s20  ;;  %p2552_p13 = scmp.lt.s32.totalorder %s2546_s20, %s2546_s20 }
  0x1e   :  { %p2553_p0 = por %p2552_p13, %p2551_p12 }
  0x20   :  { %p2554_p1 = pnand %p2553_p0, %p2547_p11 }
  0x22   :  { %2557 = shalt.err (!%p2554_p1)
}
  0x23   :  { %26 = dma.hbm_to_vmem [thread:$0]  %s2984_s0, 256, %s2681_s24, [#allocation3], %s2634_s9, %s2634_s9, %s2635_s10  }
  0x24   :  { %s2636_s22 = smov [#allocation7]   ;;  %s2637_s25 = smov [#allocation8]  }
  0x25   :  { %s46_s23 = sshll.u32 %s2636_s22, 4  ;;  %s58_s26 = sshll.u32 %s2637_s25, 4  ;;  %s47_s23 = int_to_ptr.vmem [resolvable:$true] %s46_s23  ;;  %s2718_s26 = int_to_ptr.vmem [resolvable:$true] %s58_s26 }
  0x26   :  { %s2558_s29 = scalar_lea.hbm %s2987_s3, 512 }
  0x27   :  { %p2559_p2 = scmp.ne.s32.totalorder %s2987_s3, %s2558_s29  ;;  %p2562_p3 = scmp.lt.u32.totalorder %s2558_s29, %s2987_s3 }
  0x29   :  { %p2564_p4 = pnand %p2562_p3, %p2559_p2 }
  0x2b   :  { %2567 = shalt.err (!%p2564_p4)
}
  0x2c   :  { %s2568_s0 = scalar_lea.vmem %s47_s23, 512  ;;  %p2573_p6 = scmp.lt.s32.totalorder %s47_s23, %s47_s23 }
  0x2d   :  { %p2569_p5 = scmp.ne.s32.totalorder %s47_s23, %s2568_s0  ;;  %p2574_p7 = scmp.lt.s32.totalorder %s2568_s0, %s2568_s0 }
  0x2f   :  { %p2575_p8 = por %p2574_p7, %p2573_p6 }
  0x31   :  { %p2576_p9 = pnand %p2575_p8, %p2569_p5 }
  0x33   :  { %2579 = shalt.err (!%p2576_p9)
}
  0x34   :  { %52 = dma.hbm_to_vmem [thread:$0]  %s2987_s3, 512, %s47_s23, [#allocation6], %s2634_s9, %s2634_s9, %s2635_s10  }
  0x35   :  { %s2580_s15 = scalar_lea.hbm %s2988_s4, 512 }
  0x36   :  { %p2581_p10 = scmp.ne.s32.totalorder %s2988_s4, %s2580_s15  ;;  %p2584_p11 = scmp.lt.u32.totalorder %s2580_s15, %s2988_s4 }
  0x38   :  { %p2586_p12 = pnand %p2584_p11, %p2581_p10 }
  0x3a   :  { %2589 = shalt.err (!%p2586_p12)
}
  0x3b   :  { %s2590_s20 = scalar_lea.vmem %s2718_s26, 512  ;;  %p2595_p0 = scmp.lt.s32.totalorder %s2718_s26, %s2718_s26 }
  0x3c   :  { %p2591_p13 = scmp.ne.s32.totalorder %s2718_s26, %s2590_s20  ;;  %p2596_p1 = scmp.lt.s32.totalorder %s2590_s20, %s2590_s20 }
  0x3e   :  { %p2597_p2 = por %p2596_p1, %p2595_p0 }
  0x40   :  { %p2598_p3 = pnand %p2597_p2, %p2591_p13 }
  0x42   :  { %2601 = shalt.err (!%p2598_p3)
}
  0x43   :  { %64 = dma.hbm_to_vmem [thread:$0]  %s2988_s4, 512, %s2718_s26, [#allocation9], %s2634_s9, %s2634_s9, %s2635_s10  }
  0x44   :  { %2624 = dma.done.wait [#allocation3], 256  }
  0x45   :  { %2625 = vsyncadd [#allocation3], 4294967040 }
  0x46   :  { %2626 = dma.done.wait [#allocation6], 1024  }
  0x47   :  { %2627 = vsyncadd [#allocation6], 4294966272 }
  0x48   :  { %2628 = dma.done.wait [#allocation9], 512  }
  0x49   :  { %2629 = vsyncadd [#allocation9], 4294966784  ;;  %vm92_vm0 = vcmask 261120   ;;  %v81_v0 = vld [vmem:[#allocation5] sm:$0xff]  ;;  %v82_v1 = vld [vmem:[#allocation5 + $0x8] sm:$0xff]  ;;  %v2638_v10 = vmov 0.0  }
  0x4a   :  { %v83_v2 = vld [vmem:[#allocation5 + $0x10] sm:$0xff]  ;;  %v2440_v3 = vpack.c.bf16 %v82_v1, %v81_v0  ;;  %v84_v4 = vld [vmem:[#allocation5 + $0x18] sm:$0xff]  ;;  %2309 = vmatprep.subr.mxu1 %v2638_v10  ;;  %s2639_s22 = smov 104   ;;  %s2640_s23 = smov 120   ;;  %vm2641_vm1 = vmmov 0   ;;  %vm190_vm2 = vcmask 64512  }
  0x4b   :  { %v2755_v5 = vld [vmem:[#allocation2] sm:$0xff]  ;;  %v2444_v6 = vpack.c.bf16 %v84_v4, %v83_v2  ;;  %v2759_v7 = vld [vmem:[#allocation2 + $0x8] sm:$0xff]  ;;  %2311 = vmatprep.mubr.msk.f32.mxu1 %vm2641_vm1, %v2638_v10  ;;  %s2643_s25 = smov 96   ;;  %s2644_s26 = smov 64  }
  0x4c   :  { %2306 = vmatprep.mubr.msk.f32.mxu0 %vm92_vm0, %v2755_v5  ;;  %2441 = vmatprep.subr.bf16.mxu0 %v2440_v3  ;;  %v2200_v8 = vld [vmem:[%s2986_s2] ss:$0 sm:$0xff]  ;;  %s2642_s2 = smov 112   ;;  %s2645_s29 = smov [#allocation10]  }
  0x4d   :  { %2443 = vmatpush3.bf16.msra.mxu0 %v2440_v3  ;;  %s2186_s30 = sshll.u32 %s2645_s29, 4  ;;  %s2187_s30 = int_to_ptr.vmem [resolvable:$true] %s2186_s30 }
  0x4e   :  { %2445 = vmatprep.subr.bf16.mxu0 %v2444_v6  ;;  %s2602_s7 = scalar_lea.vmem %s2187_s30, 256  ;;  %p2607_p5 = scmp.lt.s32.totalorder %s2187_s30, %s2187_s30 }
  0x4f   :  { %p2603_p4 = scmp.ne.s32.totalorder %s2187_s30, %s2602_s7  ;;  %p2608_p6 = scmp.lt.s32.totalorder %s2602_s7, %s2602_s7 }
  0x51   :  { %2447 = vmatpush3.bf16.msra.mxu0 %v2444_v6  ;;  %p2609_p7 = por %p2608_p6, %p2607_p5 }
  0x52   :  { %2329 = vmatprep.subr.mxu0 %v2638_v10 }
  0x53   :  { %p2610_p8 = pnand %p2609_p7, %p2603_p4 }
  0x54   :  { %2307 = vmatmul.mubr.msk.f32.vlgmr.msra.gmra.mrb[0].mxu0 %vm92_vm0, %v2759_v7 }
  0x55   :  { %2331 = vmatprep.mubr.msk.f32.mxu0 %vm2641_vm1, %v2638_v10 }
 0x127   :  { %v2308_v9 = vpop.f32.mrb[0].mxu0 }
 0x128   :  { %v165_v11 = vpop.f32.mrb[1].mxu0  ;;  %v2776_v13 = vadd.f32 %v2308_v9, %v2200_v8 }
 0x129   :  { %v2768_v12 = vadd.f32 %v2200_v8, %v165_v11 }
 0x12b   :  { %184 = vrot.lane.b32.xlu1 %v2768_v12, %s2639_s22  ;;  %176 = vrot.lane.b32.xlu0 %v2768_v12, %s2640_s23 }
 0x12f   :  { %178 = vrot.lane.b32.xlu1 %v2776_v13, %s2640_s23  ;;  %180 = vrot.lane.b32.xlu0 %v2768_v12, %s2642_s2 }
 0x133   :  { %186 = vrot.lane.b32.xlu1 %v2776_v13, %s2639_s22  ;;  %182 = vrot.lane.b32.xlu0 %v2776_v13, %s2642_s2 }
 0x137   :  { %188 = vrot.lane.b32.xlu0 %v2768_v12, %s2643_s25 }
 0x19d   :  { %v2783_v14 = vpop.permute.xlu1 %184  ;;  %v2785_v15 = vpop.permute.xlu0 %176 }
 0x19e   :  { %265 = vrot.lane.b32.xlu1 %v2785_v15, %s2643_s25 }
 0x1a1   :  { %v2788_v16 = vpop.permute.xlu0 %180  ;;  %v2792_v17 = vpop.permute.xlu1 %178 }
 0x1a2   :  { %493 = vrot.lane.b32.xlu1 %v2776_v13, %s2643_s25  ;;  %341 = vrot.lane.b32.xlu0 %v2788_v16, %s2643_s25 }
 0x1a5   :  { %v2794_v18 = vpop.permute.xlu0 %182  ;;  %v2798_v19 = vpop.permute.xlu1 %186 }
 0x1a6   :  { %569 = vrot.lane.b32.xlu1 %v2792_v17, %s2643_s25  ;;  %417 = vrot.lane.b32.xlu0 %v2783_v14, %s2643_s25 }
 0x1a9   :  { %v189_v20 = vpop.permute.xlu0 %188 }
 0x1aa   :  { %721 = vrot.lane.b32.xlu1 %v2798_v19, %s2643_s25  ;;  %645 = vrot.lane.b32.xlu0 %v2794_v18, %s2643_s25 }
 0x1ab   :  { %2310 = vmatpush3.xpose.msk.msra.mxu1 %vm190_vm2, %v189_v20 }
 0x1ac   :  { %2314 = vmatprep.subr.mxu1 %v2638_v10 }
 0x1ae   :  { %2312 = vmatmul.mubr.msk.f32.vlgmr.msra.gmra.mrb[0].mxu1 %vm190_vm2, %v2768_v12 }
 0x1af   :  { %2316 = vmatprep.mubr.msk.f32.mxu1 %vm2641_vm1, %v2638_v10 }
 0x210   :  { %v266_v21 = vpop.permute.xlu1 %265 }
 0x211   :  { %2315 = vmatpush3.xpose.msk.msra.mxu1 %vm190_vm2, %v266_v21 }
 0x212   :  { %2319 = vmatprep.subr.mxu1 %v2638_v10 }
 0x214   :  { %v494_v22 = vpop.permute.xlu1 %493  ;;  %2317 = vmatmul.mubr.msk.f32.vlgmr.msra.gmra.mrb[2].mxu1 %vm190_vm2, %v2785_v15  ;;  %v342_v23 = vpop.permute.xlu0 %341 }
 0x215   :  { %2320 = vmatpush3.xpose.msk.msra.mxu1 %vm190_vm2, %v342_v23  ;;  %2330 = vmatpush3.xpose.msk.msra.mxu0 %vm190_vm2, %v494_v22 }
 0x216   :  { %2321 = vmatprep.mubr.msk.f32.mxu1 %vm2641_vm1, %v2638_v10  ;;  %2324 = vmatprep.subr.mxu1 %v2638_v10 }
 0x217   :  { %2339 = vmatprep.subr.mxu0 %v2638_v10 }
 0x218   :  { %2332 = vmatmul.mubr.msk.f32.vlgmr.msra.gmra.mrb[2].mxu0 %vm190_vm2, %v2776_v13  ;;  %2322 = vmatmul.mubr.msk.f32.vlgmr.msra.gmra.mrb[4].mxu1 %vm190_vm2, %v2788_v16  ;;  %v418_v24 = vpop.permute.xlu0 %417  ;;  %v570_v25 = vpop.permute.xlu1 %569 }
 0x219   :  { %2325 = vmatpush3.xpose.msk.msra.mxu1 %vm190_vm2, %v418_v24  ;;  %2326 = vmatprep.mubr.msk.f32.mxu1 %vm2641_vm1, %v2638_v10 }
 0x21a   :  { %2334 = vmatprep.subr.mxu1 %v2638_v10  ;;  %2341 = vmatprep.mubr.msk.f32.mxu0 %vm2641_vm1, %v2638_v10 }
 0x21c   :  { %2327 = vmatmul.mubr.msk.f32.vlgmr.msra.gmra.mrb[6].mxu1 %vm190_vm2, %v2783_v14  ;;  %v646_v26 = vpop.permute.xlu0 %645  ;;  %v722_v27 = vpop.permute.xlu1 %721 }
 0x21d   :  { %2335 = vmatpush3.xpose.msk.msra.mxu1 %vm190_vm2, %v570_v25  ;;  %2340 = vmatpush3.xpose.msk.msra.mxu0 %vm190_vm2, %v646_v26 }
 0x21e   :  { %2336 = vmatprep.mubr.msk.f32.mxu1 %vm2641_vm1, %v2638_v10  ;;  %2344 = vmatprep.subr.mxu1 %v2638_v10 }
 0x21f   :  { %2349 = vmatprep.subr.mxu0 %v2638_v10 }
 0x220   :  { %2337 = vmatmul.mubr.msk.f32.vlgmr.msra.gmra.mrb[8].mxu1 %vm190_vm2, %v2792_v17  ;;  %2342 = vmatmul.mubr.msk.f32.vlgmr.msra.gmra.mrb[4].mxu0 %vm190_vm2, %v2794_v18 }
 0x221   :  { %2345 = vmatpush3.xpose.msk.msra.mxu1 %vm190_vm2, %v722_v27  ;;  %2346 = vmatprep.mubr.msk.f32.mxu1 %vm2641_vm1, %v2638_v10 }
 0x222   :  { %2351 = vmatprep.mubr.msk.f32.mxu0 %vm2641_vm1, %v2638_v10  ;;  %2354 = vmatprep.subr.mxu1 %v2638_v10 }
 0x224   :  { %2347 = vmatmul.mubr.msk.f32.vlgmr.msra.gmra.mrb[10].mxu1 %vm190_vm2, %v2798_v19 }
 0x225   :  { %2356 = vmatprep.mubr.msk.f32.mxu1 %vm2641_vm1, %v2638_v10 }
 0x281   :  { %v261_v28 = vpop.f32.mrb[0].mxu1 }
 0x282   :  { %v2313_v29 = vpop.f32.mrb[1].mxu1  ;;  %v797_v30 = vsel %vm190_vm2, %v261_v28, -inf }
 0x283   :  { %798 = vmax.xlane.f32.xlu0 %v797_v30 }
 0x2e7   :  { %v337_v31 = vpop.f32.mrb[2].mxu1 }
 0x2e8   :  { %v2318_v32 = vpop.f32.mrb[3].mxu1  ;;  %v800_v33 = vsel %vm190_vm2, %v337_v31, -inf }
 0x2e9   :  { %801 = vmax.xlane.f32.xlu0 %v800_v33 }
 0x2eb   :  { %v413_v34 = vpop.f32.mrb[4].mxu1  ;;  %v565_v35 = vpop.f32.mrb[2].mxu0 }
 0x2ec   :  { %v2323_v36 = vpop.f32.mrb[5].mxu1  ;;  %v2333_v37 = vpop.f32.mrb[3].mxu0  ;;  %v809_v38 = vsel %vm190_vm2, %v565_v35, -inf  ;;  %v803_v39 = vsel %vm190_vm2, %v413_v34, -inf }
 0x2ed   :  { %810 = vmax.xlane.f32.xlu0 %v809_v38  ;;  %804 = vmax.xlane.f32.xlu1 %v803_v39 }
 0x2ef   :  { %v489_v40 = vpop.f32.mrb[6].mxu1 }
 0x2f0   :  { %v2328_v41 = vpop.f32.mrb[7].mxu1  ;;  %v806_v42 = vsel %vm190_vm2, %v489_v40, -inf }
 0x2f1   :  { %807 = vmax.xlane.f32.xlu1 %v806_v42 }
 0x2f3   :  { %v641_v43 = vpop.f32.mrb[8].mxu1  ;;  %v717_v44 = vpop.f32.mrb[4].mxu0 }
 0x2f4   :  { %v2338_v45 = vpop.f32.mrb[9].mxu1  ;;  %v2343_v46 = vpop.f32.mrb[5].mxu0  ;;  %v812_v47 = vsel %vm190_vm2, %v641_v43, -inf  ;;  %v815_v48 = vsel %vm190_vm2, %v717_v44, -inf }
 0x2f5   :  { %813 = vmax.xlane.f32.xlu0 %v812_v47  ;;  %816 = vmax.xlane.f32.xlu1 %v815_v48 }
 0x2f7   :  { %v2857_v49 = vpop.f32.mrb[10].mxu1 }
 0x2f8   :  { %v2348_v50 = vpop.f32.mrb[11].mxu1  ;;  %v818_v51 = vsel %vm190_vm2, %v2857_v49, -inf }
 0x2f9   :  { %819 = vmax.xlane.f32.xlu0 %v818_v51 }
 0x30f   :  { %885 = vrot.lane.b32.xlu0 %v2768_v12, %s2644_s26 }
 0x310   :  { %v799_v52 = vpop.xlane.xlu0 %798 }
 0x311   :  { %v821_v53 = vsub.f32 %v261_v28, %v799_v52 }
 0x313   :  { %v829_v54 = vmul.f32 1.442695, %v821_v53 }
 0x315   :  { %2482 = vpow2.f32 %v829_v54 }
 0x31f   :  { %v2483_v55 = vpop.eup %2482 }
 0x320   :  { %v845_v56 = vsel %vm190_vm2, %v2483_v55, 0.0 }
 0x321   :  { %846 = vadd.xlane.f32.xlu1 %v845_v56 }
 0x376   :  { %v802_v57 = vpop.xlane.xlu0 %801 }
 0x377   :  { %v822_v1 = vsub.f32 %v337_v31, %v802_v57 }
 0x379   :  { %v831_v8 = vmul.f32 1.442695, %v822_v1 }
 0x37a   :  { %v805_v58 = vpop.xlane.xlu1 %804  ;;  %v811_v59 = vpop.xlane.xlu0 %810 }
 0x37b   :  { %v823_v60 = vsub.f32 %v413_v34, %v805_v58  ;;  %v825_v61 = vsub.f32 %v565_v35, %v811_v59  ;;  %v1493_v58 = vld [vmem:[#allocation7] sm:$0xff] }
 0x37d   :  { %v837_v62 = vmul.f32 1.442695, %v825_v61  ;;  %v833_v63 = vmul.f32 1.442695, %v823_v60 }
 0x37e   :  { %v808_v0 = vpop.xlane.xlu1 %807 }
 0x37f   :  { %2484 = vpow2.f32 %v837_v62  ;;  %v824_v9 = vsub.f32 %v489_v40, %v808_v0  ;;  %v1494_v0 = vld [vmem:[#allocation7 + $0x8] sm:$0xff] }
 0x380   :  { %2486 = vpow2.f32 %v833_v63 }
 0x381   :  { %v835_v21 = vmul.f32 1.442695, %v824_v9 }
 0x382   :  { %v817_v2 = vpop.xlane.xlu1 %816  ;;  %v814_v3 = vpop.xlane.xlu0 %813 }
 0x383   :  { %v827_v4 = vsub.f32 %v717_v44, %v817_v2  ;;  %v826_v6 = vsub.f32 %v641_v43, %v814_v3 }
 0x385   :  { %v841_v11 = vmul.f32 1.442695, %v827_v4  ;;  %v839_v12 = vmul.f32 1.442695, %v826_v6  ;;  %v1495_v6 = vld [vmem:[#allocation7 + $0x10] sm:$0xff] }
 0x386   :  { %v820_v20 = vpop.xlane.xlu0 %819 }
 0x387   :  { %2488 = vpow2.f32 %v841_v11  ;;  %v828_v37 = vsub.f32 %v2857_v49, %v820_v20 }
 0x388   :  { %2490 = vpow2.f32 %v839_v12 }
 0x389   :  { %2492 = vpow2.f32 %v831_v8  ;;  %v2864_v22 = vpop.eup %2484 }
 0x38a   :  { %v886_v23 = vpop.permute.xlu0 %885  ;;  %v857_v24 = vsel %vm190_vm2, %v2864_v22, 0.0  ;;  %v2487_v25 = vpop.eup %2486  ;;  %2494 = vpow2.f32 %v835_v21 }
 0x38b   :  { %2350 = vmatpush3.msra.mxu0 %v886_v23  ;;  %858 = vadd.xlane.f32.xlu0 %v857_v24  ;;  %v851_v26 = vsel %vm190_vm2, %v2487_v25, 0.0  ;;  %v2087_v23 = vld [vmem:[#allocation8] sm:$0xff]  ;;  %v2088_v24 = vld [vmem:[#allocation8 + $0x8] sm:$0xff] }
 0x38c   :  { %2359 = vmatprep.subr.mxu0 %v2638_v10 }
 0x38f   :  { %852 = vadd.xlane.f32.xlu0 %v851_v26  ;;  %v1496_v26 = vld [vmem:[#allocation7 + $0x18] sm:$0xff] }
 0x391   :  { %v2870_v27 = vpop.eup %2488 }
 0x392   :  { %v2872_v28 = vpop.eup %2490  ;;  %v863_v29 = vsel %vm190_vm2, %v2870_v27, 0.0 }
 0x393   :  { %v2493_v30 = vpop.eup %2492  ;;  %864 = vadd.xlane.f32.xlu1 %v863_v29  ;;  %v860_v31 = vsel %vm190_vm2, %v2872_v28, 0.0 }
 0x394   :  { %861 = vadd.xlane.f32.xlu0 %v860_v31  ;;  %v848_v32 = vsel %vm190_vm2, %v2493_v30, 0.0  ;;  %v2495_v33 = vpop.eup %2494  ;;  %v2090_v31 = vld [vmem:[#allocation8 + $0x18] sm:$0xff] }
 0x395   :  { %v854_v34 = vsel %vm190_vm2, %v2495_v33, 0.0 }
 0x397   :  { %849 = vadd.xlane.f32.xlu1 %v848_v32 }
 0x39b   :  { %855 = vadd.xlane.f32.xlu1 %v854_v34 }
 0x3aa   :  { %961 = vrot.lane.b32.xlu0 %v2785_v15, %s2644_s26 }
 0x3ac   :  { %1037 = vrot.lane.b32.xlu1 %v2788_v16, %s2644_s26 }
 0x3ae   :  { %v847_v35 = vpop.xlane.xlu1 %846  ;;  %1189 = vrot.lane.b32.xlu0 %v2776_v13, %s2644_s26  ;;  %v843_v13 = vmul.f32 1.442695, %v828_v37 }
 0x3af   :  { %2496 = vrcp.f32 %v847_v35 }
 0x3b0   :  { %2498 = vpow2.f32 %v843_v13 }
 0x3b2   :  { %1113 = vrot.lane.b32.xlu0 %v2783_v14, %s2644_s26 }
 0x3b6   :  { %1265 = vrot.lane.b32.xlu0 %v2792_v17, %s2644_s26 }
 0x3b9   :  { %v2497_v36 = vpop.eup %2496 }
 0x3ba   :  { %v870_v38 = vmul.f32 %v2497_v36, %v2483_v55  ;;  %1341 = vrot.lane.b32.xlu0 %v2794_v18, %s2644_s26  ;;  %v2898_v14 = vpop.eup %2498 }
 0x3bb   :  { %v866_v15 = vsel %vm190_vm2, %v2898_v14, 0.0 }
 0x3bc   :  { %2352 = vmatmul.mubr.msk.f32.vlgmr.msra.gmra.mrb[6].mxu0 %vm190_vm2, %v870_v38 }
 0x3bd   :  { %2361 = vmatprep.mubr.msk.f32.mxu0 %vm2641_vm1, %v2638_v10 }
 0x3be   :  { %1417 = vrot.lane.b32.xlu0 %v2798_v19, %s2644_s26 }
 0x3d0   :  { %867 = vadd.xlane.f32.xlu1 %v866_v15 }
 0x418   :  { %v859_v16 = vpop.xlane.xlu0 %858 }
 0x41c   :  { %v853_v17 = vpop.xlane.xlu0 %852 }
 0x41d   :  { %2500 = vrcp.f32 %v853_v17 }
 0x41e   :  { %2502 = vrcp.f32 %v859_v16 }
 0x420   :  { %v865_v18 = vpop.xlane.xlu1 %864 }
 0x421   :  { %v862_v39 = vpop.xlane.xlu0 %861 }
 0x424   :  { %v850_v40 = vpop.xlane.xlu1 %849 }
 0x425   :  { %2504 = vrcp.f32 %v850_v40  ;;  %v962_v41 = vpop.permute.xlu0 %961 }
 0x426   :  { %2355 = vmatpush3.msra.mxu1 %v962_v41  ;;  %2506 = vrcp.f32 %v865_v18 }
 0x427   :  { %2364 = vmatprep.subr.mxu1 %v2638_v10  ;;  %v2501_v42 = vpop.eup %2500 }
 0x428   :  { %v856_v19 = vpop.xlane.xlu1 %855  ;;  %v874_v44 = vmul.f32 %v2501_v42, %v2487_v25  ;;  %v2503_v46 = vpop.eup %2502 }
 0x429   :  { %2508 = vrcp.f32 %v856_v19  ;;  %v1190_v43 = vpop.permute.xlu0 %1189  ;;  %v878_v49 = vmul.f32 %v2503_v46, %v2864_v22 }
 0x42a   :  { %2510 = vrcp.f32 %v862_v39 }
 0x42c   :  { %v1038_v45 = vpop.permute.xlu1 %1037 }
 0x42d   :  { %v1114_v47 = vpop.permute.xlu0 %1113  ;;  %2360 = vmatpush3.msra.mxu0 %v1038_v45 }
 0x42e   :  { %2362 = vmatmul.mubr.msk.f32.vlgmr.msra.gmra.mrb[8].mxu0 %vm190_vm2, %v874_v44  ;;  %2369 = vmatprep.subr.mxu0 %v2638_v10 }
 0x42f   :  { %v2505_v48 = vpop.eup %2504  ;;  %2370 = vmatpush3.msra.mxu0 %v1190_v43  ;;  %2371 = vmatprep.mubr.msk.f32.mxu0 %vm2641_vm1, %v2638_v10 }
 0x430   :  { %v872_v50 = vmul.f32 %v2505_v48, %v2493_v30  ;;  %2379 = vmatprep.subr.mxu0 %v2638_v10  ;;  %v2507_v52 = vpop.eup %2506  ;;  %v2089_v30 = vld [vmem:[#allocation8 + $0x10] sm:$0xff] }
 0x431   :  { %v1266_v51 = vpop.permute.xlu0 %1265  ;;  %v882_v56 = vmul.f32 %v2507_v52, %v2870_v27  ;;  %v2452_v32 = vpack.c.bf16 %v2090_v31, %v2089_v30 }
 0x432   :  { %2357 = vmatmul.mubr.msk.f32.vlgmr.msra.gmra.mrb[12].mxu1 %vm190_vm2, %v872_v50  ;;  %2372 = vmatmul.mubr.msk.f32.vlgmr.msra.gmra.mrb[10].mxu0 %vm190_vm2, %v878_v49 }
 0x433   :  { %v2509_v53 = vpop.eup %2508  ;;  %2365 = vmatpush3.msra.mxu1 %v1114_v47  ;;  %2366 = vmatprep.mubr.msk.f32.mxu1 %vm2641_vm1, %v2638_v10 }
 0x434   :  { %v876_v54 = vmul.f32 %v2509_v53, %v2495_v33  ;;  %2374 = vmatprep.subr.mxu1 %v2638_v10  ;;  %2381 = vmatprep.mubr.msk.f32.mxu0 %vm2641_vm1, %v2638_v10  ;;  %v2511_v55 = vpop.eup %2510 }
 0x435   :  { %v1342_v57 = vpop.permute.xlu0 %1341  ;;  %v880_v59 = vmul.f32 %v2511_v55, %v2872_v28  ;;  %v2448_v28 = vpack.c.bf16 %v2088_v24, %v2087_v23 }
 0x436   :  { %2380 = vmatpush3.msra.mxu0 %v1342_v57  ;;  %2367 = vmatmul.mubr.msk.f32.vlgmr.msra.gmra.mrb[14].mxu1 %vm190_vm2, %v876_v54 }
 0x437   :  { %2375 = vmatpush3.msra.mxu1 %v1266_v51  ;;  %2382 = vmatmul.mubr.msk.f32.vlgmr.msra.gmra.mrb[12].mxu0 %vm190_vm2, %v882_v56 }
 0x438   :  { %2376 = vmatprep.mubr.msk.f32.mxu1 %vm2641_vm1, %v2638_v10  ;;  %2384 = vmatprep.subr.mxu1 %v2638_v10 }
 0x439   :  { %v1418_v60 = vpop.permute.xlu0 %1417  ;;  %2389 = vmatprep.subr.mxu0 %v2638_v10  ;;  %2391 = vmatprep.mubr.msk.f32.mxu0 %vm2641_vm1, %v2638_v10 }
 0x43a   :  { %2377 = vmatmul.mubr.msk.f32.vlgmr.msra.gmra.mrb[16].mxu1 %vm190_vm2, %v880_v59  ;;  %2390 = vmatpush3.msra.mxu0 %v1493_v58 }
 0x43b   :  { %2385 = vmatpush3.msra.mxu1 %v1418_v60  ;;  %2386 = vmatprep.mubr.msk.f32.mxu1 %vm2641_vm1, %v2638_v10 }
 0x43c   :  { %2394 = vmatprep.subr.mxu0 %v2638_v10  ;;  %2409 = vmatprep.subr.mxu1 %v2638_v10 }
 0x45d   :  { %v868_v61 = vpop.xlane.xlu1 %867 }
 0x45e   :  { %2512 = vrcp.f32 %v868_v61 }
 0x468   :  { %v2513_v62 = vpop.eup %2512 }
 0x469   :  { %v884_v63 = vmul.f32 %v2513_v62, %v2898_v14 }
 0x46b   :  { %2387 = vmatmul.mubr.msk.f32.vlgmr.msra.gmra.mrb[18].mxu1 %vm190_vm2, %v884_v63 }
 0x46c   :  { %2410 = vmatpush3.msra.mxu1 %v1493_v58  ;;  %2411 = vmatprep.mubr.msk.f32.mxu1 %vm2641_vm1, %v2638_v10 }
 0x46d   :  { %2414 = vmatprep.subr.mxu1 %v2638_v10 }
 0x48f   :  { %v957_v1 = vpop.f32.mrb[6].mxu0 }
 0x490   :  { %v2353_v2 = vpop.f32.mrb[7].mxu0  ;;  %2392 = vmatmul.mubr.msk.f32.vlgmr.msra.gmra.mrb[14].mxu0 %vm190_vm2, %v957_v1 }
 0x491   :  { %2395 = vmatpush3.msra.mxu0 %v1494_v0  ;;  %2396 = vmatprep.mubr.msk.f32.mxu0 %vm2641_vm1, %v2638_v10 }
 0x492   :  { %2399 = vmatprep.subr.mxu0 %v2638_v10 }
 0x501   :  { %v1109_v3 = vpop.f32.mrb[8].mxu0 }
 0x502   :  { %v2363_v4 = vpop.f32.mrb[9].mxu0 }
 0x505   :  { %v1033_v8 = vpop.f32.mrb[12].mxu1  ;;  %v1261_v9 = vpop.f32.mrb[10].mxu0 }
 0x506   :  { %v2358_v11 = vpop.f32.mrb[13].mxu1  ;;  %v2373_v12 = vpop.f32.mrb[11].mxu0  ;;  %2397 = vmatmul.mubr.msk.f32.vlgmr.msra.gmra.mrb[14].mxu0 %vm190_vm2, %v1033_v8  ;;  %2412 = vmatmul.mubr.msk.f32.vlgmr.msra.gmra.mrb[20].mxu1 %vm190_vm2, %v1261_v9 }
 0x507   :  { %2400 = vmatpush3.msra.mxu0 %v1495_v6  ;;  %2401 = vmatprep.mubr.msk.f32.mxu0 %vm2641_vm1, %v2638_v10 }
 0x508   :  { %2415 = vmatpush3.msra.mxu1 %v1494_v0  ;;  %2416 = vmatprep.mubr.msk.f32.mxu1 %vm2641_vm1, %v2638_v10 }
 0x509   :  { %v1185_v20 = vpop.f32.mrb[14].mxu1  ;;  %2404 = vmatprep.subr.mxu0 %v2638_v10  ;;  %2419 = vmatprep.subr.mxu1 %v2638_v10 }
 0x50a   :  { %v1413_v21 = vpop.f32.mrb[12].mxu0  ;;  %v2368_v22 = vpop.f32.mrb[15].mxu1 }
 0x50b   :  { %v2383_v25 = vpop.f32.mrb[13].mxu0 }
 0x50d   :  { %v1337_v27 = vpop.f32.mrb[16].mxu1 }
 0x50e   :  { %v2378_v29 = vpop.f32.mrb[17].mxu1  ;;  %2402 = vmatmul.mubr.msk.f32.vlgmr.msra.gmra.mrb[14].mxu0 %vm190_vm2, %v1109_v3  ;;  %2417 = vmatmul.mubr.msk.f32.vlgmr.msra.gmra.mrb[20].mxu1 %vm190_vm2, %v1337_v27 }
 0x50f   :  { %2405 = vmatpush3.msra.mxu0 %v1496_v26  ;;  %2406 = vmatprep.mubr.msk.f32.mxu0 %vm2641_vm1, %v2638_v10 }
 0x510   :  { %2420 = vmatpush3.msra.mxu1 %v1495_v6  ;;  %2421 = vmatprep.mubr.msk.f32.mxu1 %vm2641_vm1, %v2638_v10 }
 0x511   :  { %2449 = vmatprep.subr.bf16.mxu0 %v2448_v28  ;;  %2424 = vmatprep.subr.mxu1 %v2638_v10 }
 0x516   :  { %2407 = vmatmul.mubr.msk.f32.vlgmr.msra.gmra.mrb[14].mxu0 %vm190_vm2, %v1185_v20  ;;  %2422 = vmatmul.mubr.msk.f32.vlgmr.msra.gmra.mrb[20].mxu1 %vm190_vm2, %v1413_v21 }
 0x517   :  { %2451 = vmatpush3.bf16.msra.mxu0 %v2448_v28  ;;  %2437 = vmatprep.mubr.msk.f32.mxu0 %vm92_vm0, %v2755_v5  ;;  %v2237_v5 = vld [vmem:[%s2989_s5] ss:$0 sm:$0xff] }
 0x518   :  { %2453 = vmatprep.subr.bf16.mxu0 %v2452_v32  ;;  %2425 = vmatpush3.msra.mxu1 %v1496_v26 }
 0x519   :  { %2426 = vmatprep.mubr.msk.f32.mxu1 %vm2641_vm1, %v2638_v10 }
 0x51b   :  { %2455 = vmatpush3.bf16.msra.mxu0 %v2452_v32 }
 0x51e   :  { %2438 = vmatmul.mubr.msk.f32.vlgmr.msra.gmra.mrb[16].mxu0 %vm92_vm0, %v2759_v7 }
 0x53e   :  { %v1489_v33 = vpop.f32.mrb[18].mxu1 }
 0x53f   :  { %v2388_v34 = vpop.f32.mrb[19].mxu1  ;;  %2427 = vmatmul.mubr.msk.f32.vlgmr.msra.gmra.mrb[20].mxu1 %vm190_vm2, %v1489_v33 }
 0x5e9   :  { %v1785_v35 = vpop.f32.mrb[14].mxu0 }
 0x5ea   :  { %v2408_v36 = vpop.f32.mrb[15].mxu0 }
 0x5f1   :  { %v2439_v37 = vpop.f32.mrb[16].mxu0 }
 0x5f2   :  { %v2157_v38 = vpop.f32.mrb[17].mxu0 }
 0x5f3   :  { %v2166_v13 = vadd.f32 %v2157_v38, %v1785_v35 }
 0x5f5   :  { %v2175_v14 = vadd.f32 %v2237_v5, %v2166_v13 }
 0x5f7   :  { %v2177_v15 = vmax.f32 %v2175_v14, 0.0 }
 0x5f9   :  { %2179 = vst.msk [vmem:[#allocation10] sm:$0xff] %vm92_vm0, %v2177_v15 }
 0x612   :  { %v2077_v10 = vpop.f32.mrb[20].mxu1 }
 0x613   :  { %v2167_v16 = vadd.f32 %v2439_v37, %v2077_v10  ;;  %v2428_v7 = vpop.f32.mrb[21].mxu1 }
 0x615   :  { %v2176_v17 = vadd.f32 %v2237_v5, %v2167_v16 }
 0x617   :  { %v2178_v18 = vmax.f32 %v2176_v17, 0.0 }
 0x619   :  { %2180 = vst.msk [vmem:[#allocation10 + $0x8] sm:$0xff] %vm92_vm0, %v2178_v18 }
 0x61a   :  { %2613 = shalt.err (!%p2610_p8)
}
 0x61b   :  { %s2614_s11 = scalar_lea.hbm %s2990_s6, 256 }
 0x61c   :  { %p2615_p9 = scmp.ne.s32.totalorder %s2990_s6, %s2614_s11  ;;  %p2618_p10 = scmp.lt.u32.totalorder %s2614_s11, %s2990_s6 }
 0x61e   :  { %p2620_p11 = pnand %p2618_p10, %p2615_p9 }
 0x620   :  { %2623 = shalt.err (!%p2620_p11)
}
 0x621   :  { %2192 = dma.vmem_to_hbm [thread:$0]  %s2187_s30, 256, %s2990_s6, [#allocation4], %s2634_s9, %s2634_s9, %s2635_s10  }
 0x622   :  { %2630 = dma.done.wait [#allocation4], 256  }
 0x623   :  { %2631 = vsyncadd [#allocation4], 4294967040 }
 0x624   :  { %2196 = vsyncpa [#allocation3], 1 }
 0x625   :  { %2197 = vsyncpa [#allocation6], 1 }
 0x626   :  { %2198 = vsyncpa [#allocation9], 1 }
 0x627   :  { %2199 = vsyncpa [#allocation4], 1 }

</bundles_post_ra>
